<compile_context>
chip_gen: v5e
topology: v5e:2x2
jax: 0.10.0
libtpu: 0.0.40
codegen_flags: <defaults>
</compile_context>

<pallas_src>
import functools

import jax
import jax.numpy as jnp
from jax.experimental import pallas as pl
from jax.experimental.pallas import tpu as pltpu

_LANE_MIN = 128
# ~2 MiB f32 tiles: long DMA bursts, few grid steps; input+output double
# buffered = ~8 MiB, comfortably inside v5e's 16 MiB default scoped VMEM.
_TILE_BYTES = 2 * 1024 * 1024

# Sum of 8 uniform bytes ~ Normal(_IH_MEAN, _IH_STD^2)  (Irwin-Hall n=8).
_IH_MEAN = 1020.0
_IH_STD = 209.02153478  # sqrt(8 * (256**2 - 1) / 12)


def _lowbias32(x):
    """32-bit avalanche hash (lowbias32); x is uint32."""
    x = x ^ (x >> 16)
    x = x * jnp.uint32(0x7FEB352D)
    x = x ^ (x >> 15)
    x = x * jnp.uint32(0x846CA68B)
    x = x ^ (x >> 16)
    return x


def _byte_sum(w):
    """Sum of the 4 bytes of each uint32 word (range 0..1020)."""
    m = jnp.uint32(0x00FF00FF)
    s = (w & m) + ((w >> 8) & m)
    return (s & jnp.uint32(0xFFFF)) + (s >> 16)


def _gaussian_noise_kernel(seed_ref, x_ref, o_ref, *, std, tile_rows, lane):
    # Fused dtype cast (input stays in its native dtype in HBM).
    x = x_ref[...].astype(jnp.float32)

    # Per-element global counter; each element owns two PRNG words.
    row = jax.lax.broadcasted_iota(jnp.int32, x.shape, 0)
    col = jax.lax.broadcasted_iota(jnp.int32, x.shape, 1)
    gidx = (pl.program_id(0) * tile_rows + row) * lane + col
    salt = seed_ref[0].astype(jnp.uint32)                 # premixed on host, < 2**31
    ctr = gidx.astype(jnp.uint32) * jnp.uint32(2) + salt

    # Irwin-Hall(8): sum of 8 uniform bytes from two hashed words -> ~N(0,1).
    s = _byte_sum(_lowbias32(ctr)) + _byte_sum(_lowbias32(ctr + jnp.uint32(1)))
    z = (s.astype(jnp.int32).astype(jnp.float32) - jnp.float32(_IH_MEAN)) \
        * jnp.float32(1.0 / _IH_STD)

    out = x + jnp.float32(std) * z
    # clip(x+noise, low_clip, 1) == clip(x+noise, -1, 1) for both low_clip cases.
    o_ref[...] = jnp.clip(out, jnp.float32(-1.0), jnp.float32(1.0))


def _choose_tiling(rows, lane, itemsize):
    """Tile rows: sublane-aligned, ~2 MiB f32, >=2 grid steps when possible."""
    q = max(8, 32 // max(1, itemsize))                    # sublane quantum per dtype
    max_tile_rows = max(q, ((_TILE_BYTES // 4) // lane) // q * q)
    if rows <= q:
        return rows, 1                                    # single full-extent tile
    # Keep at least 2 grid steps so v7x's two TensorCores both get work.
    half = ((rows + 1) // 2 + q - 1) // q * q
    tile_rows = max(q, (min(max_tile_rows, half) // q) * q)
    if tile_rows >= rows:
        return rows, 1
    return tile_rows, -(-rows // tile_rows)


def gaussian_noise(x, var=0.001, seed=0):
    """Pallas implementation of GaussianNoise.forward (deterministic seed)."""
    std = float(var) ** 0.5
    orig_shape = x.shape
    total = int(x.size)

    xf = jnp.reshape(x, (-1,))                            # no wrapper dtype cast
    pad = (-total) % _LANE_MIN
    if pad:
        # TODO(synk): handle the unaligned tail with an in-kernel masked store
        # instead of this extra pad/slice pass (not hit for 128-aligned sizes).
        xf = jnp.pad(xf, (0, pad))
    padded = total + pad

    # Widest lane-dense last dim (multiple of 128) dividing the slab.
    lane = _LANE_MIN
    for cand in (1024, 512, 256):
        if padded % cand == 0:
            lane = cand
            break
    rows = padded // lane
    x2 = xf.reshape(rows, lane)

    tile_rows, n_tiles = _choose_tiling(rows, lane, jnp.dtype(x.dtype).itemsize)

    # Host-premixed seed salt (avoids scalar uint32 multiplies in-kernel).
    salt = (int(seed) * 0x9E3779B9 + 0x7F4A7C15) & 0x7FFFFFFF
    seed_arr = jnp.array([salt], dtype=jnp.int32)

    out2 = pl.pallas_call(
        functools.partial(_gaussian_noise_kernel, std=std,
                          tile_rows=tile_rows, lane=lane),
        out_shape=jax.ShapeDtypeStruct((rows, lane), jnp.float32),
        grid=(n_tiles,),
        in_specs=[
            pl.BlockSpec(memory_space=pltpu.MemorySpace.SMEM),   # seed salt
            pl.BlockSpec((tile_rows, lane), lambda i: (i, 0)),   # x tile
        ],
        out_specs=pl.BlockSpec((tile_rows, lane), lambda i: (i, 0)),
        compiler_params=pltpu.CompilerParams(
            dimension_semantics=("parallel",)),
    )(seed_arr, x2)

    if pad:
        return out2.reshape(-1)[:total].reshape(orig_shape)
    return out2.reshape(orig_shape)


if __name__ == "__main__":
    key = jax.random.PRNGKey(0)
    # Image-like input in [0, 1), NCHW.
    x = jax.random.uniform(key, (2, 4, 16, 16), dtype=jnp.float32)

    out = jax.block_until_ready(gaussian_noise(x, var=0.001, seed=0))

    assert out.shape == x.shape and out.dtype == jnp.float32
    assert float(jnp.max(out)) <= 1.0 + 1e-6
    assert float(jnp.min(out)) >= -1.0 - 1e-6
    # Noise (std ~= 0.032, bounded by construction) stays small vs clipped x.
    noise = out - jnp.clip(x, 0.0, 1.0)
    assert float(jnp.max(jnp.abs(noise))) < 0.5
    assert 0.02 < float(jnp.std(noise)) < 0.05
    assert abs(float(jnp.mean(noise))) < 0.01
    print("KERNEL_OK")
</pallas_src>

<mosaic_0001>
module attributes {stable_mosaic.version = 11 : i64} {
  func.func @_gaussian_noise_kernel(%arg0: i32, %arg1: memref<1xi32, #tpu.memory_space<smem>>, %arg2: memref<2x1024xf32, #tpu.memory_space<vmem>>, %arg3: memref<2x1024xf32, #tpu.memory_space<vmem>>) attributes {dimension_semantics = [#tpu.dimension_semantics<parallel>], iteration_bounds = array<i64: 1>, scalar_prefetch = 0 : i64, scratch_operands = 0 : i64, tpu.core_type = #tpu.core_type<tc>, window_params = [{transform_indices = @transform_0, window_bounds = array<i64: 1>}, {transform_indices = @transform_1, window_bounds = array<i64: 2, 1024>}, {transform_indices = @transform_2, window_bounds = array<i64: 2, 1024>}]} {
    %c0 = arith.constant 0 : index
    %c0_0 = arith.constant 0 : index
    %0 = vector.load %arg2[%c0, %c0_0] : memref<2x1024xf32, #tpu.memory_space<vmem>>, vector<2x1024xf32>
    %1 = tpu.iota {dimensions = array<i32: 0>} : vector<2x1024xi32>
    %2 = tpu.iota {dimensions = array<i32: 1>} : vector<2x1024xi32>
    %c2_i32 = arith.constant 2 : i32
    %3 = arith.muli %arg0, %c2_i32 : i32
    %4 = vector.broadcast %3 : i32 to vector<2x1024xi32>
    %5 = arith.addi %4, %1 : vector<2x1024xi32>
    %c1024_i32 = arith.constant 1024 : i32
    %6 = vector.broadcast %c1024_i32 : i32 to vector<2x1024xi32>
    %7 = arith.muli %5, %6 : vector<2x1024xi32>
    %8 = arith.addi %7, %2 : vector<2x1024xi32>
    %c0_1 = arith.constant 0 : index
    %9 = memref.load %arg1[%c0_1] : memref<1xi32, #tpu.memory_space<smem>>
    %c2_i32_2 = arith.constant 2 : i32
    %10 = vector.broadcast %c2_i32_2 : i32 to vector<2x1024xi32>
    %11 = arith.muli %8, %10 : vector<2x1024xi32>
    %12 = vector.broadcast %9 : i32 to vector<2x1024xi32>
    %13 = arith.addi %11, %12 : vector<2x1024xi32>
    %c16_i32 = arith.constant 16 : i32
    %14 = vector.broadcast %c16_i32 : i32 to vector<2x1024xi32>
    %15 = arith.shrui %13, %14 : vector<2x1024xi32>
    %16 = arith.xori %13, %15 : vector<2x1024xi32>
    %c2146121005_i32 = arith.constant 2146121005 : i32
    %17 = vector.broadcast %c2146121005_i32 : i32 to vector<2x1024xi32>
    %18 = arith.muli %16, %17 : vector<2x1024xi32>
    %c15_i32 = arith.constant 15 : i32
    %19 = vector.broadcast %c15_i32 : i32 to vector<2x1024xi32>
    %20 = arith.shrui %18, %19 : vector<2x1024xi32>
    %21 = arith.xori %18, %20 : vector<2x1024xi32>
    %c-2073254261_i32 = arith.constant -2073254261 : i32
    %22 = vector.broadcast %c-2073254261_i32 : i32 to vector<2x1024xi32>
    %23 = arith.muli %21, %22 : vector<2x1024xi32>
    %c16_i32_3 = arith.constant 16 : i32
    %24 = vector.broadcast %c16_i32_3 : i32 to vector<2x1024xi32>
    %25 = arith.shrui %23, %24 : vector<2x1024xi32>
    %26 = arith.xori %23, %25 : vector<2x1024xi32>
    %c16711935_i32 = arith.constant 16711935 : i32
    %27 = vector.broadcast %c16711935_i32 : i32 to vector<2x1024xi32>
    %28 = arith.andi %26, %27 : vector<2x1024xi32>
    %c8_i32 = arith.constant 8 : i32
    %29 = vector.broadcast %c8_i32 : i32 to vector<2x1024xi32>
    %30 = arith.shrui %26, %29 : vector<2x1024xi32>
    %c16711935_i32_4 = arith.constant 16711935 : i32
    %31 = vector.broadcast %c16711935_i32_4 : i32 to vector<2x1024xi32>
    %32 = arith.andi %30, %31 : vector<2x1024xi32>
    %33 = arith.addi %28, %32 : vector<2x1024xi32>
    %c65535_i32 = arith.constant 65535 : i32
    %34 = vector.broadcast %c65535_i32 : i32 to vector<2x1024xi32>
    %35 = arith.andi %33, %34 : vector<2x1024xi32>
    %c16_i32_5 = arith.constant 16 : i32
    %36 = vector.broadcast %c16_i32_5 : i32 to vector<2x1024xi32>
    %37 = arith.shrui %33, %36 : vector<2x1024xi32>
    %38 = arith.addi %35, %37 : vector<2x1024xi32>
    %c1_i32 = arith.constant 1 : i32
    %39 = vector.broadcast %c1_i32 : i32 to vector<2x1024xi32>
    %40 = arith.addi %13, %39 : vector<2x1024xi32>
    %c16_i32_6 = arith.constant 16 : i32
    %41 = vector.broadcast %c16_i32_6 : i32 to vector<2x1024xi32>
    %42 = arith.shrui %40, %41 : vector<2x1024xi32>
    %43 = arith.xori %40, %42 : vector<2x1024xi32>
    %c2146121005_i32_7 = arith.constant 2146121005 : i32
    %44 = vector.broadcast %c2146121005_i32_7 : i32 to vector<2x1024xi32>
    %45 = arith.muli %43, %44 : vector<2x1024xi32>
    %c15_i32_8 = arith.constant 15 : i32
    %46 = vector.broadcast %c15_i32_8 : i32 to vector<2x1024xi32>
    %47 = arith.shrui %45, %46 : vector<2x1024xi32>
    %48 = arith.xori %45, %47 : vector<2x1024xi32>
    %c-2073254261_i32_9 = arith.constant -2073254261 : i32
    %49 = vector.broadcast %c-2073254261_i32_9 : i32 to vector<2x1024xi32>
    %50 = arith.muli %48, %49 : vector<2x1024xi32>
    %c16_i32_10 = arith.constant 16 : i32
    %51 = vector.broadcast %c16_i32_10 : i32 to vector<2x1024xi32>
    %52 = arith.shrui %50, %51 : vector<2x1024xi32>
    %53 = arith.xori %50, %52 : vector<2x1024xi32>
    %c16711935_i32_11 = arith.constant 16711935 : i32
    %54 = vector.broadcast %c16711935_i32_11 : i32 to vector<2x1024xi32>
    %55 = arith.andi %53, %54 : vector<2x1024xi32>
    %c8_i32_12 = arith.constant 8 : i32
    %56 = vector.broadcast %c8_i32_12 : i32 to vector<2x1024xi32>
    %57 = arith.shrui %53, %56 : vector<2x1024xi32>
    %c16711935_i32_13 = arith.constant 16711935 : i32
    %58 = vector.broadcast %c16711935_i32_13 : i32 to vector<2x1024xi32>
    %59 = arith.andi %57, %58 : vector<2x1024xi32>
    %60 = arith.addi %55, %59 : vector<2x1024xi32>
    %c65535_i32_14 = arith.constant 65535 : i32
    %61 = vector.broadcast %c65535_i32_14 : i32 to vector<2x1024xi32>
    %62 = arith.andi %60, %61 : vector<2x1024xi32>
    %c16_i32_15 = arith.constant 16 : i32
    %63 = vector.broadcast %c16_i32_15 : i32 to vector<2x1024xi32>
    %64 = arith.shrui %60, %63 : vector<2x1024xi32>
    %65 = arith.addi %62, %64 : vector<2x1024xi32>
    %66 = arith.addi %38, %65 : vector<2x1024xi32>
    %67 = arith.sitofp %66 : vector<2x1024xi32> to vector<2x1024xf32>
    %cst = arith.constant 1.020000e+03 : f32
    %68 = vector.broadcast %cst : f32 to vector<2x1024xf32>
    %69 = arith.subf %67, %68 : vector<2x1024xf32>
    %cst_16 = arith.constant 0.00478419615 : f32
    %70 = vector.broadcast %cst_16 : f32 to vector<2x1024xf32>
    %71 = arith.mulf %69, %70 : vector<2x1024xf32>
    %cst_17 = arith.constant 0.0316227749 : f32
    %72 = vector.broadcast %cst_17 : f32 to vector<2x1024xf32>
    %73 = arith.mulf %72, %71 : vector<2x1024xf32>
    %74 = arith.addf %0, %73 : vector<2x1024xf32>
    %cst_18 = arith.constant -1.000000e+00 : f32
    %cst_19 = arith.constant 1.000000e+00 : f32
    %75 = vector.broadcast %cst_18 : f32 to vector<2x1024xf32>
    %76 = arith.maximumf %75, %74 : vector<2x1024xf32>
    %77 = vector.broadcast %cst_19 : f32 to vector<2x1024xf32>
    %78 = arith.minimumf %77, %76 : vector<2x1024xf32>
    %c0_20 = arith.constant 0 : index
    %c0_21 = arith.constant 0 : index
    %79 = vector.load %arg3[%c0_20, %c0_21] : memref<2x1024xf32, #tpu.memory_space<vmem>>, vector<2x1024xf32>
    tpu.vector_store %arg3[%c0_20, %c0_21], %78 {strides = array<i32>} : memref<2x1024xf32, #tpu.memory_space<vmem>>, vector<2x1024xf32>,
    return
  }
  func.func @transform_0(%arg0: i32) -> i32 {
    %c0_i32 = arith.constant 0 : i32
    %c0_i32_0 = arith.constant 0 : i32
    return %c0_i32 : i32
  }
  func.func @transform_1(%arg0: i32) -> (i32, i32) {
    %c0_i32 = arith.constant 0 : i32
    %c0_i32_0 = arith.constant 0 : i32
    return %arg0, %c0_i32 : i32, i32
  }
  func.func @transform_2(%arg0: i32) -> (i32, i32) {
    %c0_i32 = arith.constant 0 : i32
    %c0_i32_0 = arith.constant 0 : i32
    return %arg0, %c0_i32 : i32, i32
  }
}

</mosaic_0001>

<bundles_post_ra>
// kernel: tpu_custom_call.1
= control target key start
LH: loop header
LB: loop body
LE: loop exit
PB: predicated region body
PF: predicated region fallthrough
CT: control target
= control target key end

     0   :  { %8 = vsyncpa [#allocation4], 0  ;;  %s588_s0 = inlined_call_operand.<no memory space> [shape: s32[1], index: 0, kind: input, shape index: {}]   ;;  %s589_s1 = inlined_call_operand.hbm [shape: f32[2,1024], index: 1, kind: input, shape index: {}]   ;;  %s590_s2 = inlined_call_operand.hbm [shape: f32[2,1024], index: 2, kind: output, shape index: {}]  }
   0x1   :  { %9 = vsyncpa [#allocation5], 0  ;;  %s17_s11 = sshll.u32 %s589_s1, 4  ;;  %s472_s12 = smov [#allocation3]   ;;  %s18_s11 = int_to_ptr.hbm [resolvable:$true] %s17_s11 }
   0x2   :  { %s19_s13 = sshll.u32 %s472_s12, 4  ;;  %s20_s13 = int_to_ptr.vmem [resolvable:$true] %s19_s13 }
   0x3   :  { %22 = dma.hbm_to_vmem [thread:$0]  %s18_s11, 256, %s20_s13, [#allocation4]  }
   0x4   :  { %468 = dma.done.wait [#allocation4], 256  }
   0x5   :  { %469 = vsyncadd [#allocation4], 4294967040  ;;  %v29_v0 = vlaneseq  ;;  %v61_v11 = vstv %s588_s0  ;;  %vm372_vm0 = vcmask 1041408   ;;  %vm374_vm1 = vcmask 1045508   ;;  %s473_s0 = smov [#allocation6]   ;;  %s398_s18 = sshll.u32 %s590_s2, 4  ;;  %s399_s18 = int_to_ptr.hbm [resolvable:$true] %s398_s18 }
   0x6   :  { %vm376_vm2 = vcmask 1043456   ;;  %s396_s15 = sshll.u32 %s473_s0, 4  ;;  %s397_s15 = int_to_ptr.vmem [resolvable:$true] %s396_s15 }
   0x7   :  { %v30_v1 = vshrl.u32 %v29_v0, 7  ;;  %v32_v2 = vand.u32 127, %v29_v0 }
   0x9   :  { %v33_v3 = vadd.s32 128, %v32_v2  ;;  %v34_v4 = vadd.s32 256, %v32_v2  ;;  %v35_v5 = vadd.s32 384, %v32_v2  ;;  %v36_v6 = vadd.s32 512, %v32_v2 }
   0xa   :  { %v37_v7 = vadd.s32 640, %v32_v2  ;;  %v38_v8 = vadd.s32 768, %v32_v2  ;;  %v39_v9 = vadd.s32 896, %v32_v2  ;;  %v43_v10 = vmul.u32 1024, %v30_v1 }
   0xc   :  { %v44_v12 = vadd.s32 %v43_v10, %v32_v2  ;;  %v45_v13 = vadd.s32 %v43_v10, %v33_v3  ;;  %v46_v14 = vadd.s32 %v43_v10, %v34_v4  ;;  %v47_v15 = vadd.s32 %v43_v10, %v35_v5 }
   0xd   :  { %v48_v16 = vadd.s32 %v43_v10, %v36_v6  ;;  %v49_v17 = vadd.s32 %v43_v10, %v37_v7  ;;  %v50_v18 = vadd.s32 %v43_v10, %v38_v8  ;;  %v51_v19 = vadd.s32 %v43_v10, %v39_v9 }
   0xe   :  { %v53_v20 = vmul.u32 2, %v44_v12  ;;  %v54_v21 = vmul.u32 2, %v45_v13  ;;  %v55_v22 = vmul.u32 2, %v46_v14  ;;  %v56_v23 = vmul.u32 2, %v47_v15 }
   0xf   :  { %v57_v24 = vmul.u32 2, %v48_v16  ;;  %v58_v25 = vmul.u32 2, %v49_v17  ;;  %v59_v26 = vmul.u32 2, %v50_v18  ;;  %v60_v27 = vmul.u32 2, %v51_v19 }
  0x10   :  { %v495_v28 = vadd.s32 %v61_v11, %v53_v20  ;;  %v497_v29 = vadd.s32 %v61_v11, %v54_v21  ;;  %v499_v30 = vadd.s32 %v61_v11, %v55_v22  ;;  %v501_v31 = vadd.s32 %v61_v11, %v56_v23 }
  0x11   :  { %v503_v32 = vadd.s32 %v61_v11, %v57_v24  ;;  %v505_v33 = vadd.s32 %v61_v11, %v58_v25  ;;  %v507_v34 = vadd.s32 %v61_v11, %v59_v26  ;;  %v509_v35 = vadd.s32 %v61_v11, %v60_v27 }
  0x12   :  { %v70_v36 = vshrl.u32 %v495_v28, 16  ;;  %v71_v37 = vshrl.u32 %v497_v29, 16  ;;  %v72_v38 = vshrl.u32 %v499_v30, 16  ;;  %v73_v39 = vshrl.u32 %v501_v31, 16 }
  0x13   :  { %v74_v40 = vshrl.u32 %v503_v32, 16  ;;  %v75_v41 = vshrl.u32 %v505_v33, 16  ;;  %v76_v42 = vshrl.u32 %v507_v34, 16  ;;  %v77_v43 = vshrl.u32 %v509_v35, 16 }
  0x14   :  { %v78_v44 = vxor.u32 %v70_v36, %v495_v28  ;;  %v79_v45 = vxor.u32 %v71_v37, %v497_v29  ;;  %v80_v46 = vxor.u32 %v72_v38, %v499_v30  ;;  %v81_v47 = vxor.u32 %v73_v39, %v501_v31 }
  0x15   :  { %v82_v48 = vxor.u32 %v74_v40, %v503_v32  ;;  %v83_v49 = vxor.u32 %v75_v41, %v505_v33  ;;  %v84_v50 = vxor.u32 %v76_v42, %v507_v34  ;;  %v85_v51 = vxor.u32 %v77_v43, %v509_v35 }
  0x16   :  { %v86_v52 = vmul.u32 2146121005, %v78_v44  ;;  %v87_v53 = vmul.u32 2146121005, %v79_v45  ;;  %v88_v54 = vmul.u32 2146121005, %v80_v46 }
  0x17   :  { %v89_v55 = vmul.u32 2146121005, %v81_v47  ;;  %v90_v56 = vmul.u32 2146121005, %v82_v48  ;;  %v91_v57 = vmul.u32 2146121005, %v83_v49 }
  0x18   :  { %v92_v58 = vmul.u32 2146121005, %v84_v50  ;;  %v93_v59 = vmul.u32 2146121005, %v85_v51  ;;  %v94_v60 = vshrl.u32 %v86_v52, 15  ;;  %v95_v61 = vshrl.u32 %v87_v53, 15 }
  0x19   :  { %v96_v62 = vshrl.u32 %v88_v54, 15  ;;  %v97_v63 = vshrl.u32 %v89_v55, 15  ;;  %v98_v0 = vshrl.u32 %v90_v56, 15  ;;  %v99_v1 = vshrl.u32 %v91_v57, 15 }
  0x1a   :  { %v100_v2 = vshrl.u32 %v92_v58, 15  ;;  %v101_v3 = vshrl.u32 %v93_v59, 15  ;;  %v102_v4 = vxor.u32 %v94_v60, %v86_v52  ;;  %v103_v5 = vxor.u32 %v95_v61, %v87_v53 }
  0x1b   :  { %v104_v6 = vxor.u32 %v96_v62, %v88_v54  ;;  %v105_v7 = vxor.u32 %v97_v63, %v89_v55  ;;  %v106_v8 = vxor.u32 %v98_v0, %v90_v56  ;;  %v107_v9 = vxor.u32 %v99_v1, %v91_v57 }
  0x1c   :  { %v108_v10 = vxor.u32 %v100_v2, %v92_v58  ;;  %v109_v11 = vxor.u32 %v101_v3, %v93_v59  ;;  %v110_v12 = vmul.u32 2221713035, %v102_v4  ;;  %v111_v13 = vmul.u32 2221713035, %v103_v5 }
  0x1d   :  { %v112_v14 = vmul.u32 2221713035, %v104_v6  ;;  %v113_v15 = vmul.u32 2221713035, %v105_v7  ;;  %v114_v16 = vmul.u32 2221713035, %v106_v8 }
  0x1e   :  { %v115_v17 = vmul.u32 2221713035, %v107_v9  ;;  %v116_v18 = vmul.u32 2221713035, %v108_v10  ;;  %v117_v19 = vmul.u32 2221713035, %v109_v11 }
  0x1f   :  { %v118_v20 = vshrl.u32 %v110_v12, 16  ;;  %v119_v21 = vshrl.u32 %v111_v13, 16  ;;  %v120_v22 = vshrl.u32 %v112_v14, 16  ;;  %v121_v23 = vshrl.u32 %v113_v15, 16 }
  0x20   :  { %v122_v24 = vshrl.u32 %v114_v16, 16  ;;  %v123_v25 = vshrl.u32 %v115_v17, 16  ;;  %v124_v26 = vshrl.u32 %v116_v18, 16  ;;  %v125_v27 = vshrl.u32 %v117_v19, 16 }
  0x21   :  { %v126_v36 = vxor.u32 %v118_v20, %v110_v12  ;;  %v127_v37 = vxor.u32 %v119_v21, %v111_v13  ;;  %v128_v38 = vxor.u32 %v120_v22, %v112_v14  ;;  %v129_v39 = vxor.u32 %v121_v23, %v113_v15 }
  0x22   :  { %v130_v40 = vxor.u32 %v122_v24, %v114_v16  ;;  %v131_v41 = vxor.u32 %v123_v25, %v115_v17  ;;  %v132_v42 = vxor.u32 %v124_v26, %v116_v18  ;;  %v133_v43 = vxor.u32 %v125_v27, %v117_v19 }
  0x23   :  { %v134_v44 = vand.u32 16711935, %v126_v36  ;;  %v135_v45 = vand.u32 16711935, %v127_v37  ;;  %v136_v46 = vand.u32 16711935, %v128_v38 }
  0x24   :  { %v137_v47 = vand.u32 16711935, %v129_v39  ;;  %v138_v48 = vand.u32 16711935, %v130_v40  ;;  %v139_v49 = vand.u32 16711935, %v131_v41 }
  0x25   :  { %v140_v50 = vand.u32 16711935, %v132_v42  ;;  %v141_v51 = vand.u32 16711935, %v133_v43  ;;  %v142_v52 = vshrl.u32 %v126_v36, 8  ;;  %v143_v53 = vshrl.u32 %v127_v37, 8 }
  0x26   :  { %v144_v54 = vshrl.u32 %v128_v38, 8  ;;  %v145_v55 = vshrl.u32 %v129_v39, 8  ;;  %v146_v56 = vshrl.u32 %v130_v40, 8  ;;  %v147_v57 = vshrl.u32 %v131_v41, 8 }
  0x27   :  { %v148_v58 = vshrl.u32 %v132_v42, 8  ;;  %v149_v59 = vshrl.u32 %v133_v43, 8  ;;  %v150_v60 = vand.u32 16711935, %v142_v52  ;;  %v151_v61 = vand.u32 16711935, %v143_v53 }
  0x28   :  { %v152_v62 = vand.u32 16711935, %v144_v54  ;;  %v153_v63 = vand.u32 16711935, %v145_v55  ;;  %v154_v0 = vand.u32 16711935, %v146_v56 }
  0x29   :  { %v155_v1 = vand.u32 16711935, %v147_v57  ;;  %v156_v2 = vand.u32 16711935, %v148_v58  ;;  %v157_v3 = vand.u32 16711935, %v149_v59  ;;  %v158_v4 = vadd.s32 %v150_v60, %v134_v44 }
  0x2a   :  { %v159_v5 = vadd.s32 %v151_v61, %v135_v45  ;;  %v160_v6 = vadd.s32 %v152_v62, %v136_v46  ;;  %v527_v7 = vadd.s32 %v153_v63, %v137_v47  ;;  %v529_v8 = vadd.s32 %v154_v0, %v138_v48 }
  0x2b   :  { %v531_v9 = vadd.s32 %v155_v1, %v139_v49  ;;  %v533_v10 = vadd.s32 %v156_v2, %v140_v50  ;;  %v535_v11 = vadd.s32 %v157_v3, %v141_v51  ;;  %v166_v12 = vand.u32 65535, %v158_v4 }
  0x2c   :  { %v174_v13 = vshrl.u32 %v158_v4, 16  ;;  %v167_v14 = vand.u32 65535, %v159_v5  ;;  %v168_v15 = vand.u32 65535, %v160_v6  ;;  %v169_v16 = vand.u32 65535, %v527_v7 }
  0x2d   :  { %v170_v17 = vand.u32 65535, %v529_v8  ;;  %v171_v18 = vand.u32 65535, %v531_v9  ;;  %v172_v19 = vand.u32 65535, %v533_v10  ;;  %v173_v20 = vand.u32 65535, %v535_v11 }
  0x2e   :  { %v175_v21 = vshrl.u32 %v159_v5, 16  ;;  %v176_v22 = vshrl.u32 %v160_v6, 16  ;;  %v177_v23 = vshrl.u32 %v527_v7, 16  ;;  %v178_v24 = vshrl.u32 %v529_v8, 16 }
  0x2f   :  { %v179_v25 = vshrl.u32 %v531_v9, 16  ;;  %v180_v26 = vshrl.u32 %v533_v10, 16  ;;  %v181_v27 = vshrl.u32 %v535_v11, 16  ;;  %v547_v36 = vadd.s32 %v174_v13, %v166_v12 }
  0x30   :  { %v190_v37 = vadd.s32 1, %v495_v28  ;;  %v191_v38 = vadd.s32 1, %v497_v29  ;;  %v192_v39 = vadd.s32 1, %v499_v30  ;;  %v193_v40 = vadd.s32 1, %v501_v31 }
  0x31   :  { %v194_v41 = vadd.s32 1, %v503_v32  ;;  %v195_v42 = vadd.s32 1, %v505_v33  ;;  %v196_v43 = vadd.s32 1, %v507_v34  ;;  %v197_v44 = vadd.s32 1, %v509_v35 }
  0x32   :  { %v198_v45 = vshrl.u32 %v190_v37, 16  ;;  %v199_v46 = vshrl.u32 %v191_v38, 16  ;;  %v200_v47 = vshrl.u32 %v192_v39, 16  ;;  %v201_v48 = vshrl.u32 %v193_v40, 16 }
  0x33   :  { %v202_v49 = vshrl.u32 %v194_v41, 16  ;;  %v203_v28 = vshrl.u32 %v195_v42, 16  ;;  %v204_v50 = vshrl.u32 %v196_v43, 16  ;;  %v205_v29 = vshrl.u32 %v197_v44, 16 }
  0x34   :  { %v206_v51 = vxor.u32 %v198_v45, %v190_v37  ;;  %v207_v30 = vxor.u32 %v199_v46, %v191_v38  ;;  %v208_v52 = vxor.u32 %v200_v47, %v192_v39  ;;  %v209_v31 = vxor.u32 %v201_v48, %v193_v40 }
  0x35   :  { %v210_v53 = vxor.u32 %v202_v49, %v194_v41  ;;  %v211_v32 = vxor.u32 %v203_v28, %v195_v42  ;;  %v212_v54 = vxor.u32 %v204_v50, %v196_v43  ;;  %v213_v33 = vxor.u32 %v205_v29, %v197_v44 }
  0x36   :  { %v214_v55 = vmul.u32 2146121005, %v206_v51  ;;  %v557_v34 = vadd.s32 %v175_v21, %v167_v14  ;;  %v215_v35 = vmul.u32 2146121005, %v207_v30  ;;  %v216_v56 = vmul.u32 2146121005, %v208_v52 }
  0x37   :  { %v217_v57 = vmul.u32 2146121005, %v209_v31  ;;  %v559_v58 = vadd.s32 %v176_v22, %v168_v15  ;;  %v218_v59 = vmul.u32 2146121005, %v210_v53  ;;  %v219_v60 = vmul.u32 2146121005, %v211_v32 }
  0x38   :  { %v220_v61 = vmul.u32 2146121005, %v212_v54  ;;  %v221_v62 = vmul.u32 2146121005, %v213_v33  ;;  %v222_v63 = vshrl.u32 %v214_v55, 15  ;;  %v223_v0 = vshrl.u32 %v215_v35, 15 }
  0x39   :  { %v224_v1 = vshrl.u32 %v216_v56, 15  ;;  %v225_v2 = vshrl.u32 %v217_v57, 15  ;;  %v226_v3 = vshrl.u32 %v218_v59, 15  ;;  %v227_v4 = vshrl.u32 %v219_v60, 15 }
  0x3a   :  { %v228_v5 = vshrl.u32 %v220_v61, 15  ;;  %v229_v6 = vshrl.u32 %v221_v62, 15  ;;  %v230_v12 = vxor.u32 %v222_v63, %v214_v55  ;;  %v231_v13 = vxor.u32 %v223_v0, %v215_v35 }
  0x3b   :  { %v232_v14 = vxor.u32 %v224_v1, %v216_v56  ;;  %v233_v21 = vxor.u32 %v225_v2, %v217_v57  ;;  %v234_v37 = vxor.u32 %v226_v3, %v218_v59  ;;  %v235_v38 = vxor.u32 %v227_v4, %v219_v60 }
  0x3c   :  { %v236_v15 = vxor.u32 %v228_v5, %v220_v61  ;;  %v237_v22 = vxor.u32 %v229_v6, %v221_v62  ;;  %v238_v39 = vmul.u32 2221713035, %v230_v12  ;;  %v239_v40 = vmul.u32 2221713035, %v231_v13 }
  0x3d   :  { %v240_v41 = vmul.u32 2221713035, %v232_v14  ;;  %v563_v42 = vadd.s32 %v177_v23, %v169_v16  ;;  %v241_v43 = vmul.u32 2221713035, %v233_v21  ;;  %v242_v44 = vmul.u32 2221713035, %v234_v37 }
  0x3e   :  { %v243_v45 = vmul.u32 2221713035, %v235_v38  ;;  %v244_v46 = vmul.u32 2221713035, %v236_v15  ;;  %v245_v47 = vmul.u32 2221713035, %v237_v22  ;;  %v186_v56 = vadd.s32 %v178_v24, %v170_v17 }
  0x3f   :  { %v246_v48 = vshrl.u32 %v238_v39, 16  ;;  %v247_v49 = vshrl.u32 %v239_v40, 16  ;;  %v248_v28 = vshrl.u32 %v240_v41, 16  ;;  %v249_v50 = vshrl.u32 %v241_v43, 16 }
  0x40   :  { %v250_v29 = vshrl.u32 %v242_v44, 16  ;;  %v251_v51 = vshrl.u32 %v243_v45, 16  ;;  %v252_v30 = vshrl.u32 %v244_v46, 16  ;;  %v253_v52 = vshrl.u32 %v245_v47, 16 }
  0x41   :  { %v254_v31 = vxor.u32 %v246_v48, %v238_v39  ;;  %v255_v53 = vxor.u32 %v247_v49, %v239_v40  ;;  %v256_v32 = vxor.u32 %v248_v28, %v240_v41  ;;  %v257_v54 = vxor.u32 %v249_v50, %v241_v43 }
  0x42   :  { %v258_v7 = vxor.u32 %v250_v29, %v242_v44  ;;  %v259_v16 = vxor.u32 %v251_v51, %v243_v45  ;;  %v260_v23 = vxor.u32 %v252_v30, %v244_v46  ;;  %v261_v33 = vxor.u32 %v253_v52, %v245_v47 }
  0x43   :  { %v262_v55 = vand.u32 16711935, %v254_v31  ;;  %v263_v35 = vand.u32 16711935, %v255_v53  ;;  %v264_v57 = vand.u32 16711935, %v256_v32  ;;  %v187_v61 = vadd.s32 %v179_v25, %v171_v18 }
  0x44   :  { %v265_v59 = vand.u32 16711935, %v257_v54  ;;  %v266_v60 = vand.u32 16711935, %v258_v7  ;;  %v267_v62 = vand.u32 16711935, %v259_v16  ;;  %v188_v17 = vadd.s32 %v180_v26, %v172_v19 }
  0x45   :  { %v268_v63 = vand.u32 16711935, %v260_v23  ;;  %v269_v0 = vand.u32 16711935, %v261_v33  ;;  %v270_v1 = vshrl.u32 %v254_v31, 8  ;;  %v271_v2 = vshrl.u32 %v255_v53, 8 }
  0x46   :  { %v272_v3 = vshrl.u32 %v256_v32, 8  ;;  %v273_v4 = vshrl.u32 %v257_v54, 8  ;;  %v274_v5 = vshrl.u32 %v258_v7, 8  ;;  %v275_v6 = vshrl.u32 %v259_v16, 8 }
  0x47   :  { %v276_v12 = vshrl.u32 %v260_v23, 8  ;;  %v277_v8 = vshrl.u32 %v261_v33, 8  ;;  %v278_v24 = vand.u32 16711935, %v270_v1  ;;  %v279_v13 = vand.u32 16711935, %v271_v2 }
  0x48   :  { %v280_v9 = vand.u32 16711935, %v272_v3  ;;  %v189_v18 = vadd.s32 %v181_v27, %v173_v20  ;;  %v281_v25 = vand.u32 16711935, %v273_v4  ;;  %v282_v14 = vand.u32 16711935, %v274_v5 }
  0x49   :  { %v283_v21 = vand.u32 16711935, %v275_v6  ;;  %v284_v37 = vand.u32 16711935, %v276_v12  ;;  %v285_v38 = vand.u32 16711935, %v277_v8  ;;  %v286_v15 = vadd.s32 %v278_v24, %v262_v55 }
  0x4a   :  { %v287_v22 = vadd.s32 %v279_v13, %v263_v35  ;;  %v288_v39 = vadd.s32 %v280_v9, %v264_v57  ;;  %v289_v40 = vadd.s32 %v281_v25, %v265_v59  ;;  %v290_v41 = vadd.s32 %v282_v14, %v266_v60 }
  0x4b   :  { %v291_v10 = vadd.s32 %v283_v21, %v267_v62  ;;  %v292_v19 = vadd.s32 %v284_v37, %v268_v63  ;;  %v293_v26 = vadd.s32 %v285_v38, %v269_v0  ;;  %v294_v43 = vand.u32 65535, %v286_v15 }
  0x4c   :  { %v295_v44 = vand.u32 65535, %v287_v22  ;;  %v296_v45 = vand.u32 65535, %v288_v39  ;;  %v297_v46 = vand.u32 65535, %v289_v40  ;;  %v298_v47 = vand.u32 65535, %v290_v41 }
  0x4d   :  { %v299_v11 = vand.u32 65535, %v291_v10  ;;  %v300_v20 = vand.u32 65535, %v292_v19  ;;  %v301_v27 = vand.u32 65535, %v293_v26  ;;  %v302_v48 = vshrl.u32 %v286_v15, 16 }
  0x4e   :  { %v303_v49 = vshrl.u32 %v287_v22, 16  ;;  %v304_v28 = vshrl.u32 %v288_v39, 16  ;;  %v305_v50 = vshrl.u32 %v289_v40, 16  ;;  %v306_v29 = vshrl.u32 %v290_v41, 16 }
  0x4f   :  { %v307_v51 = vshrl.u32 %v291_v10, 16  ;;  %v308_v30 = vshrl.u32 %v292_v19, 16  ;;  %v309_v52 = vshrl.u32 %v293_v26, 16  ;;  %v310_v31 = vadd.s32 %v302_v48, %v294_v43  ;;  %v28_v48 = vld [vmem:[#allocation3 + $0x8] sm:$0xff] }
  0x50   :  { %v311_v53 = vadd.s32 %v303_v49, %v295_v44  ;;  %v312_v32 = vadd.s32 %v304_v28, %v296_v45  ;;  %v313_v54 = vadd.s32 %v305_v50, %v297_v46  ;;  %v314_v7 = vadd.s32 %v306_v29, %v298_v47  ;;  %v27_v47 = vld [vmem:[#allocation3] sm:$0xff] }
  0x51   :  { %v315_v16 = vadd.s32 %v307_v51, %v299_v11  ;;  %v316_v23 = vadd.s32 %v308_v30, %v300_v20  ;;  %v317_v33 = vadd.s32 %v309_v52, %v301_v27  ;;  %v318_v55 = vadd.s32 %v310_v31, %v547_v36 }
  0x52   :  { %v319_v35 = vadd.s32 %v311_v53, %v557_v34  ;;  %v320_v57 = vadd.s32 %v312_v32, %v559_v58  ;;  %v321_v59 = vadd.s32 %v313_v54, %v563_v42  ;;  %v322_v60 = vadd.s32 %v314_v7, %v186_v56 }
  0x53   :  { %v323_v62 = vadd.s32 %v315_v16, %v187_v61  ;;  %v324_v63 = vadd.s32 %v316_v23, %v188_v17  ;;  %v325_v0 = vadd.s32 %v317_v33, %v189_v18  ;;  %v326_v1 = vcvt.s32.f32 %v318_v55 }
  0x54   :  { %v327_v2 = vcvt.s32.f32 %v319_v35  ;;  %v328_v3 = vcvt.s32.f32 %v320_v57  ;;  %v329_v4 = vcvt.s32.f32 %v321_v59  ;;  %v330_v5 = vcvt.s32.f32 %v322_v60 }
  0x55   :  { %v331_v6 = vcvt.s32.f32 %v323_v62  ;;  %v332_v12 = vcvt.s32.f32 %v324_v63  ;;  %v333_v8 = vcvt.s32.f32 %v325_v0  ;;  %v408_v24 = vadd.f32 -1020.0, %v326_v1 }
  0x56   :  { %v409_v36 = vadd.f32 -1020.0, %v327_v2  ;;  %v410_v13 = vadd.f32 -1020.0, %v328_v3  ;;  %v411_v34 = vadd.f32 -1020.0, %v329_v4  ;;  %v412_v9 = vadd.f32 -1020.0, %v330_v5 }
  0x57   :  { %v413_v58 = vadd.f32 -1020.0, %v331_v6  ;;  %v414_v25 = vadd.f32 -1020.0, %v332_v12  ;;  %v415_v42 = vadd.f32 -1020.0, %v333_v8  ;;  %v342_v56 = vmul.f32 0.004784196, %v408_v24 }
  0x58   :  { %v343_v61 = vmul.f32 0.004784196, %v409_v36  ;;  %v344_v17 = vmul.f32 0.004784196, %v410_v13  ;;  %v345_v18 = vmul.f32 0.004784196, %v411_v34 }
  0x59   :  { %v346_v14 = vmul.f32 0.004784196, %v412_v9  ;;  %v347_v21 = vmul.f32 0.004784196, %v413_v58  ;;  %v348_v37 = vmul.f32 0.004784196, %v414_v25 }
  0x5a   :  { %v349_v38 = vmul.f32 0.004784196, %v415_v42  ;;  %v350_v15 = vmul.f32 0.031622775, %v342_v56  ;;  %v351_v22 = vmul.f32 0.031622775, %v343_v61 }
  0x5b   :  { %v352_v39 = vmul.f32 0.031622775, %v344_v17  ;;  %v353_v40 = vmul.f32 0.031622775, %v345_v18  ;;  %v354_v41 = vmul.f32 0.031622775, %v346_v14 }
  0x5c   :  { %v355_v10 = vmul.f32 0.031622775, %v347_v21  ;;  %v356_v19 = vmul.f32 0.031622775, %v348_v37  ;;  %v357_v26 = vmul.f32 0.031622775, %v349_v38 }
  0x5d   :  { %v366_v43 = vrot.slane %v351_v22, 6  ;;  %v367_v44 = vrot.slane %v352_v39, 4  ;;  %v368_v45 = vrot.slane %v353_v40, 2 }
  0x5e   :  { %v369_v46 = vrot.slane %v355_v10, 6  ;;  %v370_v11 = vrot.slane %v356_v19, 4  ;;  %v371_v20 = vrot.slane %v357_v26, 2 }
  0x5f   :  { %v373_v27 = vsel %vm372_vm0, %v350_v15, %v366_v43  ;;  %v375_v49 = vsel %vm374_vm1, %v367_v44, %v368_v45 }
  0x60   :  { %v378_v28 = vsel %vm372_vm0, %v354_v41, %v369_v46  ;;  %v377_v50 = vsel %vm376_vm2, %v373_v27, %v375_v49  ;;  %v379_v29 = vsel %vm374_vm1, %v370_v11, %v371_v20 }
  0x61   :  { %v380_v51 = vsel %vm376_vm2, %v378_v28, %v379_v29  ;;  %v383_v30 = vadd.f32 %v377_v50, %v27_v47 }
  0x62   :  { %v384_v52 = vadd.f32 %v380_v51, %v28_v48 }
  0x63   :  { %v416_v31 = vclamps-f32 %v383_v30, 1.0 }
  0x64   :  { %v417_v53 = vclamps-f32 %v384_v52, 1.0 }
  0x65   :  { %389 = vst [vmem:[#allocation6] sm:$0xff] %v416_v31 }
  0x66   :  { %390 = vst [vmem:[#allocation6 + $0x8] sm:$0xff] %v417_v53 }
  0x67   :  { %401 = dma.vmem_to_hbm [thread:$0]  %s397_s15, 256, %s399_s18, [#allocation5]  }
  0x68   :  { %470 = dma.done.wait [#allocation5], 256  }
  0x69   :  { %471 = vsyncadd [#allocation5], 4294967040 }
  0x6a   :  { %406 = vsyncpa [#allocation4], 1 }
  0x6b   :  { %407 = vsyncpa [#allocation5], 1 }

</bundles_post_ra>
